<compile_context>
chip_gen: v6e
topology: v6e:2x2x1
jax: 0.10.0
libtpu: 0.0.40
codegen_flags: <defaults>
</compile_context>

<pallas_src>
import numpy as np
import jax
import jax.numpy as jnp
from jax import lax
from jax.experimental import pallas as pl
from jax.experimental.pallas import tpu as pltpu


def _round_up(n, m):
    return ((n + m - 1) // m) * m


def _default_col_tile():
    # v5e MXU is 4x128^2 -> a 128-wide N tile loses nothing and halves the
    # per-step VMEM under v5e's small default scoped-VMEM budget; v6e/v7x
    # have 256-wide MXUs -> keep 256.
    try:
        kind = jax.devices()[0].device_kind.lower()
        if "v5e" in kind or "v5 lite" in kind or "v5lite" in kind:
            return 128
    except Exception:
        pass
    return 256


# ------------- Pass A:  Z = select(col < first_idx, X, W1 @ X + b1) --------
def _stage1_kernel(xr_ref, xi_ref, w1r_ref, w1i_ref, w1s_ref,
                   b1r_ref, b1i_ref, mask_ref, zr_ref, zi_ref):
    Xr = xr_ref[...]
    Xi = xi_ref[...]
    # Karatsuba complex matmul: 3 real MXU passes (W1s = W1r + W1i precomputed).
    p1 = jnp.dot(w1r_ref[...], Xr, preferred_element_type=jnp.float32)
    p2 = jnp.dot(w1i_ref[...], Xi, preferred_element_type=jnp.float32)
    p3 = jnp.dot(w1s_ref[...], Xr + Xi, preferred_element_type=jnp.float32)
    y1r = p1 - p2 + b1r_ref[...]
    y1i = (p3 - p1 - p2) + b1i_ref[...]
    # Column mask: 1 on the first_idx passthrough columns -> keep X there.
    m = mask_ref[...]
    zr_ref[...] = y1r + (Xr - y1r) * m
    zi_ref[...] = y1i + (Xi - y1i) * m


# ------------- Pass B:  out = Z @ W2full + b2full ---------------------------
def _stage2_kernel(zr_ref, zi_ref, w2r_ref, w2i_ref, b2r_ref, b2i_ref,
                   or_ref, oi_ref):
    k = pl.program_id(1)

    # Output tile is resident across the k (reduction) axis: accumulate
    # directly into the f32 output refs (no scratch accumulators).
    @pl.when(k == 0)
    def _():
        or_ref[...] = jnp.zeros_like(or_ref)
        oi_ref[...] = jnp.zeros_like(oi_ref)

    Zr = zr_ref[...]
    Zi = zi_ref[...]
    W2r = w2r_ref[...]
    W2i = w2i_ref[...]
    q1 = jnp.dot(Zr, W2r, preferred_element_type=jnp.float32)
    q2 = jnp.dot(Zi, W2i, preferred_element_type=jnp.float32)
    q3 = jnp.dot(Zr + Zi, W2r + W2i, preferred_element_type=jnp.float32)
    or_ref[...] += q1 - q2
    oi_ref[...] += q3 - q1 - q2

    @pl.when(k == pl.num_programs(1) - 1)
    def _():
        or_ref[...] += b2r_ref[...]
        oi_ref[...] += b2i_ref[...]


class PallasNN:
    """JAX/Pallas equivalent of the PyTorch NN module."""

    def __init__(self, M, freq_bins, first_idx, col_tile=None):
        self.M = int(M)
        self.freq_bins = int(freq_bins)
        self.first_idx = int(first_idx)
        two_m = 2 * self.M
        R = self.freq_bins - self.first_idx

        # Logical (unpadded) complex128 parameters, identical to PyTorch init:
        # identity weights, zero biases.
        self.W1 = np.eye(two_m, dtype=np.complex128)
        self.b1 = np.zeros((two_m,), dtype=np.complex128)
        self.W2 = np.eye(R, dtype=np.complex128)
        self.b2 = np.zeros((R,), dtype=np.complex128)

        col_tile = _default_col_tile() if col_tile is None else int(col_tile)
        F = self.freq_bins
        # Lane-dense padding with no excess: Fp = round_up(F, 128); tile =
        # largest multiple of 128 <= col_tile that divides Fp.
        Fp = _round_up(F, 128)
        t = max(128, (min(col_tile, Fp) // 128) * 128)
        while Fp % t:
            t -= 128
        self._tile, self._Fp = t, Fp
        self._P = _round_up(two_m, 8)

        self._build()

    # Allows testing with non-trivial weights while keeping the same forward.
    def set_weights(self, W1, b1, W2, b2):
        two_m = 2 * self.M
        R = self.freq_bins - self.first_idx
        self.W1 = np.asarray(W1, dtype=np.complex128).reshape(two_m, two_m)
        self.b1 = np.asarray(b1, dtype=np.complex128).reshape(two_m)
        self.W2 = np.asarray(W2, dtype=np.complex128).reshape(R, R)
        self.b2 = np.asarray(b2, dtype=np.complex128).reshape(R)
        self._build()

    def _build(self):
        M, F, fi = self.M, self.freq_bins, self.first_idx
        two_m = 2 * M
        P, Fp, tile = self._P, self._Fp, self._tile
        f32 = 4

        # ---- padded split re/im float32 planes for the kernels ----
        W1r = np.zeros((P, P), np.float32); W1r[:two_m, :two_m] = self.W1.real
        W1i = np.zeros((P, P), np.float32); W1i[:two_m, :two_m] = self.W1.imag
        W1s = W1r + W1i                      # precomputed Karatsuba sum
        b1r = np.zeros((P, 1), np.float32); b1r[:two_m, 0] = self.b1.real
        b1i = np.zeros((P, 1), np.float32); b1i[:two_m, 0] = self.b1.imag
        mask = np.zeros((1, Fp), np.float32); mask[0, :fi] = 1.0

        # Right-multiply W2full: identity on the passthrough block, W2.T on
        # the processed block, zeros on padding (so padded / junk columns of Z
        # contribute nothing and Pass B is a single plain GEMM).
        W2fr = np.zeros((Fp, Fp), np.float32)
        W2fi = np.zeros((Fp, Fp), np.float32)
        if fi > 0:
            W2fr[:fi, :fi] = np.eye(fi, dtype=np.float32)
        W2fr[fi:F, fi:F] = self.W2.real.T
        W2fi[fi:F, fi:F] = self.W2.imag.T
        b2r = np.zeros((1, Fp), np.float32); b2r[0, fi:F] = self.b2.real
        b2i = np.zeros((1, Fp), np.float32); b2i[0, fi:F] = self.b2.imag

        params_a = tuple(jnp.asarray(a) for a in (W1r, W1i, W1s, b1r, b1i, mask))
        params_b = tuple(jnp.asarray(a) for a in (W2fr, W2fi, b2r, b2i))

        nk = Fp // tile

        # ---- Pass A: grid over input-column tiles only (Stage 1 hoisted) ----
        vmem_a = (3 * P * P + 2 * P) * f32                  # resident W1/b1
        vmem_a += 2 * (4 * P * tile + tile) * f32           # dbl-buffered tiles
        cp_a = pltpu.CompilerParams(
            dimension_semantics=("parallel",),
            vmem_limit_bytes=min(max(2 * vmem_a + (4 << 20), 32 << 20), 100 << 20),
        )
        pass_a = pl.pallas_call(
            _stage1_kernel,
            out_shape=(jax.ShapeDtypeStruct((P, Fp), jnp.float32),
                       jax.ShapeDtypeStruct((P, Fp), jnp.float32)),
            grid=(nk,),
            in_specs=[pl.BlockSpec((P, tile), lambda k: (0, k)),
                      pl.BlockSpec((P, tile), lambda k: (0, k)),
                      pl.BlockSpec((P, P), lambda k: (0, 0)),
                      pl.BlockSpec((P, P), lambda k: (0, 0)),
                      pl.BlockSpec((P, P), lambda k: (0, 0)),
                      pl.BlockSpec((P, 1), lambda k: (0, 0)),
                      pl.BlockSpec((P, 1), lambda k: (0, 0)),
                      pl.BlockSpec((1, tile), lambda k: (0, k))],
            out_specs=(pl.BlockSpec((P, tile), lambda k: (0, k)),
                       pl.BlockSpec((P, tile), lambda k: (0, k))),
            compiler_params=cp_a,
        )

        # ---- Pass B: (j, k) grid, j parallel (megacore), k reduction --------
        vmem_b = 2 * (4 * P * tile + 2 * tile * tile + 2 * tile) * f32
        cp_b = pltpu.CompilerParams(
            dimension_semantics=("parallel", "arbitrary"),
            vmem_limit_bytes=min(max(2 * vmem_b + (4 << 20), 32 << 20), 100 << 20),
        )
        pass_b = pl.pallas_call(
            _stage2_kernel,
            out_shape=(jax.ShapeDtypeStruct((P, Fp), jnp.float32),
                       jax.ShapeDtypeStruct((P, Fp), jnp.float32)),
            grid=(nk, nk),
            in_specs=[pl.BlockSpec((P, tile), lambda j, k: (0, k)),
                      pl.BlockSpec((P, tile), lambda j, k: (0, k)),
                      pl.BlockSpec((tile, tile), lambda j, k: (k, j)),
                      pl.BlockSpec((tile, tile), lambda j, k: (k, j)),
                      pl.BlockSpec((1, tile), lambda j, k: (0, j)),
                      pl.BlockSpec((1, tile), lambda j, k: (0, j))],
            out_specs=(pl.BlockSpec((P, tile), lambda j, k: (0, j)),
                       pl.BlockSpec((P, tile), lambda j, k: (0, j))),
            compiler_params=cp_b,
        )

        def forward(x):
            x2 = jnp.reshape(x, (two_m, F))
            Xr = jnp.pad(jnp.real(x2).astype(jnp.float32),
                         ((0, P - two_m), (0, Fp - F)))
            Xi = jnp.pad(jnp.imag(x2).astype(jnp.float32),
                         ((0, P - two_m), (0, Fp - F)))
            Zr, Zi = pass_a(Xr, Xi, *params_a)
            Yr, Yi = pass_b(Zr, Zi, *params_b)
            y = lax.complex(Yr[:two_m, :F], Yi[:two_m, :F])
            return jnp.reshape(y, (M, 2, F))

        self._forward = jax.jit(forward)

    def __call__(self, x):
        return self._forward(x)


def _reference_numpy(x, net: PallasNN):
    """Host complex128 reference (matches the PyTorch complex128 math)."""
    two_m = 2 * net.M
    xx = np.asarray(x).astype(np.complex128).reshape(two_m, net.freq_bins)
    first = xx[:, :net.first_idx]
    rem = xx[:, net.first_idx:]
    y1 = net.W1 @ rem + net.b1[:, None]
    y2 = y1 @ net.W2.T + net.b2[None, :]
    out = np.concatenate([first, y2], axis=1)
    return out.reshape(net.M, 2, net.freq_bins)


if __name__ == "__main__":
    M, freq_bins, first_idx = 4, 16, 4   # small shapes consistent with the module

    key = jax.random.PRNGKey(0)
    kr, ki = jax.random.split(key)
    x_re = jax.random.normal(kr, (M, 2, freq_bins), dtype=jnp.float32)
    x_im = jax.random.normal(ki, (M, 2, freq_bins), dtype=jnp.float32)
    x = (x_re + 1j * x_im).astype(jnp.complex64)

    # 1) Module as specified (identity weights, zero biases).
    net = PallasNN(M, freq_bins, first_idx)
    out = jax.block_until_ready(net(x))
    ref = _reference_numpy(x, net)
    assert out.shape == (M, 2, freq_bins), out.shape
    assert np.allclose(np.asarray(out), ref, atol=1e-4, rtol=1e-4)

    # 2) Same forward with non-trivial complex weights, to exercise the GEMM,
    #    bias and passthrough paths of the kernels.
    two_m, R = 2 * M, freq_bins - first_idx
    rng = np.random.default_rng(0)
    W1 = rng.standard_normal((two_m, two_m)) + 1j * rng.standard_normal((two_m, two_m))
    b1 = rng.standard_normal((two_m,)) + 1j * rng.standard_normal((two_m,))
    W2 = rng.standard_normal((R, R)) + 1j * rng.standard_normal((R, R))
    b2 = rng.standard_normal((R,)) + 1j * rng.standard_normal((R,))
    net.set_weights(W1, b1, W2, b2)
    out2 = jax.block_until_ready(net(x))
    ref2 = _reference_numpy(x, net)
    assert np.allclose(np.asarray(out2), ref2, atol=2e-3, rtol=2e-3)

    print("KERNEL_OK")
</pallas_src>

<mosaic_0001>
module attributes {stable_mosaic.version = 11 : i64} {
  func.func @_stage1_kernel(%arg0: i32, %arg1: memref<8x128xf32, #tpu.memory_space<vmem>>, %arg2: memref<8x128xf32, #tpu.memory_space<vmem>>, %arg3: memref<8x8xf32, #tpu.memory_space<vmem>>, %arg4: memref<8x8xf32, #tpu.memory_space<vmem>>, %arg5: memref<8x8xf32, #tpu.memory_space<vmem>>, %arg6: memref<8x1xf32, #tpu.memory_space<vmem>>, %arg7: memref<8x1xf32, #tpu.memory_space<vmem>>, %arg8: memref<1x128xf32, #tpu.memory_space<vmem>>, %arg9: memref<8x128xf32, #tpu.memory_space<vmem>>, %arg10: memref<8x128xf32, #tpu.memory_space<vmem>>) attributes {dimension_semantics = [#tpu.dimension_semantics<parallel>], iteration_bounds = array<i64: 1>, scalar_prefetch = 0 : i64, scratch_operands = 0 : i64, tpu.core_type = #tpu.core_type<tc>, window_params = [{transform_indices = @transform_0, window_bounds = array<i64: 8, 128>}, {transform_indices = @transform_1, window_bounds = array<i64: 8, 128>}, {pipeline_mode = #tpu.pipeline_mode<synchronous>, transform_indices = @transform_2, window_bounds = array<i64: 8, 8>}, {pipeline_mode = #tpu.pipeline_mode<synchronous>, transform_indices = @transform_3, window_bounds = array<i64: 8, 8>}, {pipeline_mode = #tpu.pipeline_mode<synchronous>, transform_indices = @transform_4, window_bounds = array<i64: 8, 8>}, {pipeline_mode = #tpu.pipeline_mode<synchronous>, transform_indices = @transform_5, window_bounds = array<i64: 8, 1>}, {pipeline_mode = #tpu.pipeline_mode<synchronous>, transform_indices = @transform_6, window_bounds = array<i64: 8, 1>}, {transform_indices = @transform_7, window_bounds = array<i64: 1, 128>}, {transform_indices = @transform_8, window_bounds = array<i64: 8, 128>}, {transform_indices = @transform_9, window_bounds = array<i64: 8, 128>}]} {
    %c0 = arith.constant 0 : index
    %c0_0 = arith.constant 0 : index
    %0 = vector.load %arg1[%c0, %c0_0] : memref<8x128xf32, #tpu.memory_space<vmem>>, vector<8x128xf32>
    %c0_1 = arith.constant 0 : index
    %c0_2 = arith.constant 0 : index
    %1 = vector.load %arg2[%c0_1, %c0_2] : memref<8x128xf32, #tpu.memory_space<vmem>>, vector<8x128xf32>
    %c0_3 = arith.constant 0 : index
    %c0_4 = arith.constant 0 : index
    %2 = vector.load %arg3[%c0_3, %c0_4] : memref<8x8xf32, #tpu.memory_space<vmem>>, vector<8x8xf32>
    %cst = arith.constant dense<0.000000e+00> : vector<8x128xf32>
    %3 = tpu.matmul %2, %0, %cst {dimension_numbers = #tpu.dot_dimension_numbers<[1], [0], [0], [1], [0, 0, 1, 1], [], []>} : vector<8x8xf32>, vector<8x128xf32>, vector<8x128xf32> -> vector<8x128xf32>
    %c0_5 = arith.constant 0 : index
    %c0_6 = arith.constant 0 : index
    %4 = vector.load %arg4[%c0_5, %c0_6] : memref<8x8xf32, #tpu.memory_space<vmem>>, vector<8x8xf32>
    %cst_7 = arith.constant dense<0.000000e+00> : vector<8x128xf32>
    %5 = tpu.matmul %4, %1, %cst_7 {dimension_numbers = #tpu.dot_dimension_numbers<[1], [0], [0], [1], [0, 0, 1, 1], [], []>} : vector<8x8xf32>, vector<8x128xf32>, vector<8x128xf32> -> vector<8x128xf32>
    %c0_8 = arith.constant 0 : index
    %c0_9 = arith.constant 0 : index
    %6 = vector.load %arg5[%c0_8, %c0_9] : memref<8x8xf32, #tpu.memory_space<vmem>>, vector<8x8xf32>
    %7 = arith.addf %0, %1 : vector<8x128xf32>
    %cst_10 = arith.constant dense<0.000000e+00> : vector<8x128xf32>
    %8 = tpu.matmul %6, %7, %cst_10 {dimension_numbers = #tpu.dot_dimension_numbers<[1], [0], [0], [1], [0, 0, 1, 1], [], []>} : vector<8x8xf32>, vector<8x128xf32>, vector<8x128xf32> -> vector<8x128xf32>
    %9 = arith.subf %3, %5 : vector<8x128xf32>
    %c0_11 = arith.constant 0 : index
    %c0_12 = arith.constant 0 : index
    %10 = vector.load %arg6[%c0_11, %c0_12] : memref<8x1xf32, #tpu.memory_space<vmem>>, vector<8x1xf32>
    %11 = vector.broadcast %10 : vector<8x1xf32> to vector<8x128xf32>
    %12 = arith.addf %9, %11 : vector<8x128xf32>
    %13 = arith.subf %8, %3 : vector<8x128xf32>
    %14 = arith.subf %13, %5 : vector<8x128xf32>
    %c0_13 = arith.constant 0 : index
    %c0_14 = arith.constant 0 : index
    %15 = vector.load %arg7[%c0_13, %c0_14] : memref<8x1xf32, #tpu.memory_space<vmem>>, vector<8x1xf32>
    %16 = vector.broadcast %15 : vector<8x1xf32> to vector<8x128xf32>
    %17 = arith.addf %14, %16 : vector<8x128xf32>
    %c0_15 = arith.constant 0 : index
    %c0_16 = arith.constant 0 : index
    %18 = vector.load %arg8[%c0_15, %c0_16] : memref<1x128xf32, #tpu.memory_space<vmem>>, vector<1x128xf32>
    %19 = arith.subf %0, %12 : vector<8x128xf32>
    %20 = vector.broadcast %18 : vector<1x128xf32> to vector<8x128xf32>
    %21 = arith.mulf %19, %20 : vector<8x128xf32>
    %22 = arith.addf %12, %21 : vector<8x128xf32>
    %c0_17 = arith.constant 0 : index
    %c0_18 = arith.constant 0 : index
    %23 = vector.load %arg9[%c0_17, %c0_18] : memref<8x128xf32, #tpu.memory_space<vmem>>, vector<8x128xf32>
    tpu.vector_store %arg9[%c0_17, %c0_18], %22 {strides = array<i32>} : memref<8x128xf32, #tpu.memory_space<vmem>>, vector<8x128xf32>,
    %24 = arith.subf %1, %17 : vector<8x128xf32>
    %25 = vector.broadcast %18 : vector<1x128xf32> to vector<8x128xf32>
    %26 = arith.mulf %24, %25 : vector<8x128xf32>
    %27 = arith.addf %17, %26 : vector<8x128xf32>
    %c0_19 = arith.constant 0 : index
    %c0_20 = arith.constant 0 : index
    %28 = vector.load %arg10[%c0_19, %c0_20] : memref<8x128xf32, #tpu.memory_space<vmem>>, vector<8x128xf32>
    tpu.vector_store %arg10[%c0_19, %c0_20], %27 {strides = array<i32>} : memref<8x128xf32, #tpu.memory_space<vmem>>, vector<8x128xf32>,
    return
  }
  func.func @transform_0(%arg0: i32) -> (i32, i32) {
    %c0_i32 = arith.constant 0 : i32
    %c0_i32_0 = arith.constant 0 : i32
    return %c0_i32, %arg0 : i32, i32
  }
  func.func @transform_1(%arg0: i32) -> (i32, i32) {
    %c0_i32 = arith.constant 0 : i32
    %c0_i32_0 = arith.constant 0 : i32
    return %c0_i32, %arg0 : i32, i32
  }
  func.func @transform_2(%arg0: i32) -> (i32, i32) {
    %c0_i32 = arith.constant 0 : i32
    %c0_i32_0 = arith.constant 0 : i32
    %c0_i32_1 = arith.constant 0 : i32
    return %c0_i32, %c0_i32_0 : i32, i32
  }
  func.func @transform_3(%arg0: i32) -> (i32, i32) {
    %c0_i32 = arith.constant 0 : i32
    %c0_i32_0 = arith.constant 0 : i32
    %c0_i32_1 = arith.constant 0 : i32
    return %c0_i32, %c0_i32_0 : i32, i32
  }
  func.func @transform_4(%arg0: i32) -> (i32, i32) {
    %c0_i32 = arith.constant 0 : i32
    %c0_i32_0 = arith.constant 0 : i32
    %c0_i32_1 = arith.constant 0 : i32
    return %c0_i32, %c0_i32_0 : i32, i32
  }
  func.func @transform_5(%arg0: i32) -> (i32, i32) {
    %c0_i32 = arith.constant 0 : i32
    %c0_i32_0 = arith.constant 0 : i32
    %c0_i32_1 = arith.constant 0 : i32
    return %c0_i32, %c0_i32_0 : i32, i32
  }
  func.func @transform_6(%arg0: i32) -> (i32, i32) {
    %c0_i32 = arith.constant 0 : i32
    %c0_i32_0 = arith.constant 0 : i32
    %c0_i32_1 = arith.constant 0 : i32
    return %c0_i32, %c0_i32_0 : i32, i32
  }
  func.func @transform_7(%arg0: i32) -> (i32, i32) {
    %c0_i32 = arith.constant 0 : i32
    %c0_i32_0 = arith.constant 0 : i32
    return %c0_i32, %arg0 : i32, i32
  }
  func.func @transform_8(%arg0: i32) -> (i32, i32) {
    %c0_i32 = arith.constant 0 : i32
    %c0_i32_0 = arith.constant 0 : i32
    return %c0_i32, %arg0 : i32, i32
  }
  func.func @transform_9(%arg0: i32) -> (i32, i32) {
    %c0_i32 = arith.constant 0 : i32
    %c0_i32_0 = arith.constant 0 : i32
    return %c0_i32, %arg0 : i32, i32
  }
}

module attributes {stable_mosaic.version = 11 : i64} {
  func.func @_stage2_kernel(%arg0: i32, %arg1: i32, %arg2: memref<8x128xf32, #tpu.memory_space<vmem>>, %arg3: memref<8x128xf32, #tpu.memory_space<vmem>>, %arg4: memref<128x128xf32, #tpu.memory_space<vmem>>, %arg5: memref<128x128xf32, #tpu.memory_space<vmem>>, %arg6: memref<1x128xf32, #tpu.memory_space<vmem>>, %arg7: memref<1x128xf32, #tpu.memory_space<vmem>>, %arg8: memref<8x128xf32, #tpu.memory_space<vmem>>, %arg9: memref<8x128xf32, #tpu.memory_space<vmem>>) attributes {dimension_semantics = [#tpu.dimension_semantics<parallel>, #tpu.dimension_semantics<arbitrary>], iteration_bounds = array<i64: 1, 1>, scalar_prefetch = 0 : i64, scratch_operands = 0 : i64, tpu.core_type = #tpu.core_type<tc>, window_params = [{transform_indices = @transform_0, window_bounds = array<i64: 8, 128>}, {transform_indices = @transform_1, window_bounds = array<i64: 8, 128>}, {transform_indices = @transform_2, window_bounds = array<i64: 128, 128>}, {transform_indices = @transform_3, window_bounds = array<i64: 128, 128>}, {transform_indices = @transform_4, window_bounds = array<i64: 1, 128>}, {transform_indices = @transform_5, window_bounds = array<i64: 1, 128>}, {transform_indices = @transform_6, window_bounds = array<i64: 8, 128>}, {transform_indices = @transform_7, window_bounds = array<i64: 8, 128>}]} {
    %c0_i32 = arith.constant 0 : i32
    %0 = arith.cmpi eq, %arg1, %c0_i32 : i32
    %1 = arith.extui %0 : i1 to i32
    %c0_i32_0 = arith.constant 0 : i32
    %2 = arith.cmpi ne, %1, %c0_i32_0 : i32
    scf.if %2 {
      %cst_20 = arith.constant 0.000000e+00 : f32
      %24 = vector.broadcast %cst_20 : f32 to vector<8x128xf32>
      %c0_21 = arith.constant 0 : index
      %c0_22 = arith.constant 0 : index
      %25 = vector.load %arg8[%c0_21, %c0_22] : memref<8x128xf32, #tpu.memory_space<vmem>>, vector<8x128xf32>
      tpu.vector_store %arg8[%c0_21, %c0_22], %24 {strides = array<i32>} : memref<8x128xf32, #tpu.memory_space<vmem>>, vector<8x128xf32>,
      %cst_23 = arith.constant 0.000000e+00 : f32
      %26 = vector.broadcast %cst_23 : f32 to vector<8x128xf32>
      %c0_24 = arith.constant 0 : index
      %c0_25 = arith.constant 0 : index
      %27 = vector.load %arg9[%c0_24, %c0_25] : memref<8x128xf32, #tpu.memory_space<vmem>>, vector<8x128xf32>
      tpu.vector_store %arg9[%c0_24, %c0_25], %26 {strides = array<i32>} : memref<8x128xf32, #tpu.memory_space<vmem>>, vector<8x128xf32>,
    } else {
    }
    %c0 = arith.constant 0 : index
    %c0_1 = arith.constant 0 : index
    %3 = vector.load %arg2[%c0, %c0_1] : memref<8x128xf32, #tpu.memory_space<vmem>>, vector<8x128xf32>
    %c0_2 = arith.constant 0 : index
    %c0_3 = arith.constant 0 : index
    %4 = vector.load %arg3[%c0_2, %c0_3] : memref<8x128xf32, #tpu.memory_space<vmem>>, vector<8x128xf32>
    %c0_4 = arith.constant 0 : index
    %c0_5 = arith.constant 0 : index
    %5 = vector.load %arg4[%c0_4, %c0_5] : memref<128x128xf32, #tpu.memory_space<vmem>>, vector<128x128xf32>
    %c0_6 = arith.constant 0 : index
    %c0_7 = arith.constant 0 : index
    %6 = vector.load %arg5[%c0_6, %c0_7] : memref<128x128xf32, #tpu.memory_space<vmem>>, vector<128x128xf32>
    %cst = arith.constant dense<0.000000e+00> : vector<8x128xf32>
    %7 = tpu.matmul %3, %5, %cst {dimension_numbers = #tpu.dot_dimension_numbers<[1], [0], [0], [1], [0, 0, 1, 1], [], []>} : vector<8x128xf32>, vector<128x128xf32>, vector<8x128xf32> -> vector<8x128xf32>
    %cst_8 = arith.constant dense<0.000000e+00> : vector<8x128xf32>
    %8 = tpu.matmul %4, %6, %cst_8 {dimension_numbers = #tpu.dot_dimension_numbers<[1], [0], [0], [1], [0, 0, 1, 1], [], []>} : vector<8x128xf32>, vector<128x128xf32>, vector<8x128xf32> -> vector<8x128xf32>
    %9 = arith.addf %3, %4 : vector<8x128xf32>
    %10 = arith.addf %5, %6 : vector<128x128xf32>
    %cst_9 = arith.constant dense<0.000000e+00> : vector<8x128xf32>
    %11 = tpu.matmul %9, %10, %cst_9 {dimension_numbers = #tpu.dot_dimension_numbers<[1], [0], [0], [1], [0, 0, 1, 1], [], []>} : vector<8x128xf32>, vector<128x128xf32>, vector<8x128xf32> -> vector<8x128xf32>
    %c0_10 = arith.constant 0 : index
    %c0_11 = arith.constant 0 : index
    %12 = vector.load %arg8[%c0_10, %c0_11] : memref<8x128xf32, #tpu.memory_space<vmem>>, vector<8x128xf32>
    %13 = arith.subf %7, %8 : vector<8x128xf32>
    %14 = arith.addf %12, %13 : vector<8x128xf32>
    %c0_12 = arith.constant 0 : index
    %c0_13 = arith.constant 0 : index
    %15 = vector.load %arg8[%c0_12, %c0_13] : memref<8x128xf32, #tpu.memory_space<vmem>>, vector<8x128xf32>
    tpu.vector_store %arg8[%c0_12, %c0_13], %14 {strides = array<i32>} : memref<8x128xf32, #tpu.memory_space<vmem>>, vector<8x128xf32>,
    %c0_14 = arith.constant 0 : index
    %c0_15 = arith.constant 0 : index
    %16 = vector.load %arg9[%c0_14, %c0_15] : memref<8x128xf32, #tpu.memory_space<vmem>>, vector<8x128xf32>
    %17 = arith.subf %11, %7 : vector<8x128xf32>
    %18 = arith.subf %17, %8 : vector<8x128xf32>
    %19 = arith.addf %16, %18 : vector<8x128xf32>
    %c0_16 = arith.constant 0 : index
    %c0_17 = arith.constant 0 : index
    %20 = vector.load %arg9[%c0_16, %c0_17] : memref<8x128xf32, #tpu.memory_space<vmem>>, vector<8x128xf32>
    tpu.vector_store %arg9[%c0_16, %c0_17], %19 {strides = array<i32>} : memref<8x128xf32, #tpu.memory_space<vmem>>, vector<8x128xf32>,
    %c0_i32_18 = arith.constant 0 : i32
    %21 = arith.cmpi eq, %arg1, %c0_i32_18 : i32
    %22 = arith.extui %21 : i1 to i32
    %c0_i32_19 = arith.constant 0 : i32
    %23 = arith.cmpi ne, %22, %c0_i32_19 : i32
    scf.if %23 {
      %c0_20 = arith.constant 0 : index
      %c0_21 = arith.constant 0 : index
      %24 = vector.load %arg8[%c0_20, %c0_21] : memref<8x128xf32, #tpu.memory_space<vmem>>, vector<8x128xf32>
      %c0_22 = arith.constant 0 : index
      %c0_23 = arith.constant 0 : index
      %25 = vector.load %arg6[%c0_22, %c0_23] : memref<1x128xf32, #tpu.memory_space<vmem>>, vector<1x128xf32>
      %26 = vector.broadcast %25 : vector<1x128xf32> to vector<8x128xf32>
      %27 = arith.addf %24, %26 : vector<8x128xf32>
      %c0_24 = arith.constant 0 : index
      %c0_25 = arith.constant 0 : index
      %28 = vector.load %arg8[%c0_24, %c0_25] : memref<8x128xf32, #tpu.memory_space<vmem>>, vector<8x128xf32>
      tpu.vector_store %arg8[%c0_24, %c0_25], %27 {strides = array<i32>} : memref<8x128xf32, #tpu.memory_space<vmem>>, vector<8x128xf32>,
      %c0_26 = arith.constant 0 : index
      %c0_27 = arith.constant 0 : index
      %29 = vector.load %arg9[%c0_26, %c0_27] : memref<8x128xf32, #tpu.memory_space<vmem>>, vector<8x128xf32>
      %c0_28 = arith.constant 0 : index
      %c0_29 = arith.constant 0 : index
      %30 = vector.load %arg7[%c0_28, %c0_29] : memref<1x128xf32, #tpu.memory_space<vmem>>, vector<1x128xf32>
      %31 = vector.broadcast %30 : vector<1x128xf32> to vector<8x128xf32>
      %32 = arith.addf %29, %31 : vector<8x128xf32>
      %c0_30 = arith.constant 0 : index
      %c0_31 = arith.constant 0 : index
      %33 = vector.load %arg9[%c0_30, %c0_31] : memref<8x128xf32, #tpu.memory_space<vmem>>, vector<8x128xf32>
      tpu.vector_store %arg9[%c0_30, %c0_31], %32 {strides = array<i32>} : memref<8x128xf32, #tpu.memory_space<vmem>>, vector<8x128xf32>,
    } else {
    }
    return
  }
  func.func @transform_0(%arg0: i32, %arg1: i32) -> (i32, i32) {
    %c0_i32 = arith.constant 0 : i32
    %c0_i32_0 = arith.constant 0 : i32
    return %c0_i32, %arg1 : i32, i32
  }
  func.func @transform_1(%arg0: i32, %arg1: i32) -> (i32, i32) {
    %c0_i32 = arith.constant 0 : i32
    %c0_i32_0 = arith.constant 0 : i32
    return %c0_i32, %arg1 : i32, i32
  }
  func.func @transform_2(%arg0: i32, %arg1: i32) -> (i32, i32) {
    %c0_i32 = arith.constant 0 : i32
    return %arg1, %arg0 : i32, i32
  }
  func.func @transform_3(%arg0: i32, %arg1: i32) -> (i32, i32) {
    %c0_i32 = arith.constant 0 : i32
    return %arg1, %arg0 : i32, i32
  }
  func.func @transform_4(%arg0: i32, %arg1: i32) -> (i32, i32) {
    %c0_i32 = arith.constant 0 : i32
    %c0_i32_0 = arith.constant 0 : i32
    return %c0_i32, %arg0 : i32, i32
  }
  func.func @transform_5(%arg0: i32, %arg1: i32) -> (i32, i32) {
    %c0_i32 = arith.constant 0 : i32
    %c0_i32_0 = arith.constant 0 : i32
    return %c0_i32, %arg0 : i32, i32
  }
  func.func @transform_6(%arg0: i32, %arg1: i32) -> (i32, i32) {
    %c0_i32 = arith.constant 0 : i32
    %c0_i32_0 = arith.constant 0 : i32
    return %c0_i32, %arg0 : i32, i32
  }
  func.func @transform_7(%arg0: i32, %arg1: i32) -> (i32, i32) {
    %c0_i32 = arith.constant 0 : i32
    %c0_i32_0 = arith.constant 0 : i32
    return %c0_i32, %arg0 : i32, i32
  }
}

</mosaic_0001>

<bundles_post_ra>
// kernel: custom-call.1
= control target key start
LH: loop header
LB: loop body
LE: loop exit
PB: predicated region body
PF: predicated region fallthrough
CT: control target
= control target key end

     0   :  { %s51_s0 = inlined_call_operand.hbm [shape: c64[4,2,16], index: 0, kind: input, shape index: {}]   ;;  %s52_s1 = inlined_call_operand.vmem [shape: f32[4,2,16], index: 1, kind: output, shape index: {}]  }
   0x1   :  { %s2_s8 = scalar_lea.hbm %s51_s0, 128 }
   0x2   :  { %3 = vsyncpa [#allocation0], 0  ;;  %s4_s11 = sshll.u32 %s52_s1, 4  ;;  %s5_s11 = int_to_ptr.vmem [resolvable:$true] %s4_s11 }
   0x3   :  { %s20_s12 = scalar_lea.vmem %s5_s11, 128  ;;  %p25_p1 = scmp.lt.s32.totalorder %s5_s11, %s5_s11 }
   0x4   :  { %p21_p0 = scmp.ne.s32.totalorder %s5_s11, %s20_s12  ;;  %p26_p2 = scmp.lt.s32.totalorder %s20_s12, %s20_s12 }
   0x6   :  { %p27_p3 = por %p26_p2, %p25_p1 }
   0x8   :  { %p28_p4 = pnand %p27_p3, %p21_p0 }
   0xa   :  { %31 = shalt.err (!%p28_p4)  }
   0xb   :  { %7 = dma.hbm_to_vmem [thread:$0]  %s2_s8, 128, %s5_s11, [#allocation0] }
   0xc   :  { %33 = dma.done.wait [#allocation0], 128  }
   0xd   :  { %34 = vsyncadd [#allocation0], 4294967168 }
   0xe   :  { %9 = vsyncpa [#allocation0], 1 }

// kernel: custom-call
= control target key start
LH: loop header
LB: loop body
LE: loop exit
PB: predicated region body
PF: predicated region fallthrough
CT: control target
= control target key end

     0   :  { %2 = vsyncpa [#allocation0], 0  ;;  %s47_s0 = inlined_call_operand.hbm [shape: c64[4,2,16], index: 0, kind: input, shape index: {}]   ;;  %s48_s1 = inlined_call_operand.vmem [shape: f32[4,2,16], index: 1, kind: output, shape index: {}]  }
   0x1   :  { %s3_s8 = sshll.u32 %s48_s1, 4  ;;  %s4_s8 = int_to_ptr.vmem [resolvable:$true] %s3_s8 }
   0x2   :  { %s17_s9 = scalar_lea.vmem %s4_s8, 128  ;;  %p22_p1 = scmp.lt.s32.totalorder %s4_s8, %s4_s8 }
   0x3   :  { %p18_p0 = scmp.ne.s32.totalorder %s4_s8, %s17_s9  ;;  %p23_p2 = scmp.lt.s32.totalorder %s17_s9, %s17_s9 }
   0x5   :  { %p24_p3 = por %p23_p2, %p22_p1 }
   0x7   :  { %p25_p4 = pnand %p24_p3, %p18_p0 }
   0x9   :  { %28 = shalt.err (!%p25_p4)  }
   0xa   :  { %6 = dma.hbm_to_vmem [thread:$0]  %s47_s0, 128, %s4_s8, [#allocation0] }
   0xb   :  { %29 = dma.done.wait [#allocation0], 128  }
   0xc   :  { %30 = vsyncadd [#allocation0], 4294967168 }
   0xd   :  { %8 = vsyncpa [#allocation0], 1 }

// kernel: custom-call.2
= control target key start
LH: loop header
LB: loop body
LE: loop exit
PB: predicated region body
PF: predicated region fallthrough
CT: control target
= control target key end

     0   :  { %s92_s0 = inlined_call_operand.vmem [shape: f32[4,2,16], index: 0, kind: input, shape index: {}]   ;;  %s93_s1 = inlined_call_operand.vmem [shape: f32[4,2,16], index: 1, kind: input, shape index: {}]   ;;  %s94_s2 = inlined_call_operand.hbm [shape: c64[4,2,16], index: 2, kind: output, shape index: {}]  }
   0x1   :  { %s3_s11 = scalar_lea.hbm %s94_s2, 128 }
   0x2   :  { %4 = vsyncpa [#allocation0], 0  ;;  %s5_s14 = sshll.u32 %s92_s0, 4  ;;  %s6_s14 = int_to_ptr.vmem [resolvable:$true] %s5_s14 }
   0x3   :  { %s18_s15 = scalar_lea.vmem %s6_s14, 128  ;;  %p23_p1 = scmp.lt.s32.totalorder %s6_s14, %s6_s14 }
   0x4   :  { %p19_p0 = scmp.ne.s32.totalorder %s6_s14, %s18_s15  ;;  %p24_p2 = scmp.lt.s32.totalorder %s18_s15, %s18_s15 }
   0x6   :  { %p25_p3 = por %p24_p2, %p23_p1 }
   0x8   :  { %p26_p4 = pnand %p25_p3, %p19_p0 }
   0xa   :  { %29 = shalt.err (!%p26_p4)  }
   0xb   :  { %8 = dma.vmem_to_hbm [thread:$0]  %s6_s14, 128, %s94_s2, [#allocation0] }
   0xc   :  { %61 = dma.done.wait [#allocation0], 128  }
   0xd   :  { %62 = vsyncadd [#allocation0], 4294967168 }
   0xe   :  { %10 = vsyncpa [#allocation0], 1 }
   0xf   :  { %11 = vsyncpa [#allocation1], 0  ;;  %s12_s0 = sshll.u32 %s93_s1, 4  ;;  %s13_s0 = int_to_ptr.vmem [resolvable:$true] %s12_s0 }
  0x10   :  { %s38_s20 = scalar_lea.vmem %s13_s0, 128  ;;  %p43_p6 = scmp.lt.s32.totalorder %s13_s0, %s13_s0 }
  0x11   :  { %p39_p5 = scmp.ne.s32.totalorder %s13_s0, %s38_s20  ;;  %p44_p7 = scmp.lt.s32.totalorder %s38_s20, %s38_s20 }
  0x13   :  { %p45_p8 = por %p44_p7, %p43_p6 }
  0x15   :  { %p46_p9 = pnand %p45_p8, %p39_p5 }
  0x17   :  { %49 = shalt.err (!%p46_p9)  }
  0x18   :  { %15 = dma.vmem_to_hbm [thread:$0]  %s13_s0, 128, %s3_s11, [#allocation1] }
  0x19   :  { %63 = dma.done.wait [#allocation1], 128  }
  0x1a   :  { %64 = vsyncadd [#allocation1], 4294967168 }
  0x1b   :  { %17 = vsyncpa [#allocation1], 1 }

// kernel: forward.3
= control target key start
LH: loop header
LB: loop body
LE: loop exit
PB: predicated region body
PF: predicated region fallthrough
CT: control target
= control target key end

     0   :  { %v492_v0 = vmov 0.0   ;;  %vm493_vm0 = vmmov 0   ;;  %s815_s2 = inlined_call_operand.vmem [shape: f32[128,128], index: 2, kind: input, shape index: {}]   ;;  %s816_s3 = inlined_call_operand.vmem [shape: f32[128,128], index: 3, kind: input, shape index: {}]   ;;  %s817_s0 = inlined_call_operand.vmem [shape: f32[8,128], index: 0, kind: input, shape index: {}]   ;;  %s818_s1 = inlined_call_operand.vmem [shape: f32[8,128], index: 1, kind: input, shape index: {}]   ;;  %s819_s4 = inlined_call_operand.vmem [shape: f32[1,128], index: 4, kind: input, shape index: {}, may-alias: {4,5}]   ;;  %s820_s6 = inlined_call_operand.vmem [shape: f32[8,128], index: 6, kind: output, shape index: {0}]   ;;  %s821_s5 = inlined_call_operand.vmem [shape: f32[1,128], index: 5, kind: input, shape index: {}, may-alias: {4,5}]   ;;  %s822_s7 = inlined_call_operand.vmem [shape: f32[8,128], index: 7, kind: output, shape index: {1}]  }
   0x1   :  { %385 = vmatprep.subr.mxu0 %v492_v0  ;;  %v538_v1 = vld [vmem:[%s815_s2 + $0x78] sm:$0xff]  ;;  %420 = vmatprep.subr.mxu1 %v492_v0  ;;  %v549_v3 = vld [vmem:[%s815_s2 + $0x70] sm:$0xff]  ;;  %v563_v5 = vld [vmem:[%s815_s2 + $0x68] sm:$0xff] }
   0x2   :  { %v544_v2 = vld [vmem:[%s816_s3 + $0x78] sm:$0xff]  ;;  %386 = vmatpush3.msra.mxu0 %v538_v1  ;;  %v556_v4 = vld [vmem:[%s816_s3 + $0x70] sm:$0xff]  ;;  %v568_v6 = vld [vmem:[%s816_s3 + $0x68] sm:$0xff]  ;;  %417 = vmatprep.mubr.msk.f32.mxu0 %vm493_vm0, %v492_v0 }
   0x3   :  { %421 = vmatpush3.msra.mxu1 %v544_v2  ;;  %387 = vmatprep.subr.mxu0 %v492_v0  ;;  %v577_v7 = vld [vmem:[%s815_s2 + $0x60] sm:$0xff]  ;;  %v591_v9 = vld [vmem:[%s815_s2 + $0x58] sm:$0xff]  ;;  %v605_v11 = vld [vmem:[%s815_s2 + $0x50] sm:$0xff]  ;;  %v221_v34 = vadd.f32 %v544_v2, %v538_v1  ;;  %v220_v36 = vadd.f32 %v556_v4, %v549_v3  ;;  %v219_v37 = vadd.f32 %v568_v6, %v563_v5 }
   0x4   :  { %422 = vmatprep.subr.mxu1 %v492_v0  ;;  %388 = vmatpush3.msra.mxu0 %v549_v3  ;;  %v582_v8 = vld [vmem:[%s816_s3 + $0x60] sm:$0xff]  ;;  %v596_v10 = vld [vmem:[%s816_s3 + $0x58] sm:$0xff]  ;;  %v610_v12 = vld [vmem:[%s816_s3 + $0x50] sm:$0xff] }
   0x5   :  { %423 = vmatpush3.msra.mxu1 %v556_v4  ;;  %389 = vmatprep.subr.mxu0 %v492_v0  ;;  %v619_v13 = vld [vmem:[%s815_s2 + $0x48] sm:$0xff]  ;;  %v633_v15 = vld [vmem:[%s815_s2 + $0x40] sm:$0xff]  ;;  %v647_v17 = vld [vmem:[%s815_s2 + $0x38] sm:$0xff]  ;;  %v218_v38 = vadd.f32 %v582_v8, %v577_v7  ;;  %v217_v39 = vadd.f32 %v596_v10, %v591_v9  ;;  %v216_v40 = vadd.f32 %v610_v12, %v605_v11 }
   0x6   :  { %424 = vmatprep.subr.mxu1 %v492_v0  ;;  %390 = vmatpush3.msra.mxu0 %v563_v5  ;;  %v624_v14 = vld [vmem:[%s816_s3 + $0x48] sm:$0xff]  ;;  %v638_v16 = vld [vmem:[%s816_s3 + $0x40] sm:$0xff]  ;;  %v652_v18 = vld [vmem:[%s816_s3 + $0x38] sm:$0xff] }
   0x7   :  { %425 = vmatpush3.msra.mxu1 %v568_v6  ;;  %391 = vmatprep.subr.mxu0 %v492_v0  ;;  %v661_v19 = vld [vmem:[%s815_s2 + $0x30] sm:$0xff]  ;;  %v675_v21 = vld [vmem:[%s815_s2 + $0x28] sm:$0xff]  ;;  %v689_v23 = vld [vmem:[%s815_s2 + $0x20] sm:$0xff]  ;;  %v215_v41 = vadd.f32 %v624_v14, %v619_v13  ;;  %v214_v42 = vadd.f32 %v638_v16, %v633_v15  ;;  %v213_v43 = vadd.f32 %v652_v18, %v647_v17 }
   0x8   :  { %426 = vmatprep.subr.mxu1 %v492_v0  ;;  %392 = vmatpush3.msra.mxu0 %v577_v7  ;;  %v666_v20 = vld [vmem:[%s816_s3 + $0x30] sm:$0xff]  ;;  %v680_v22 = vld [vmem:[%s816_s3 + $0x28] sm:$0xff]  ;;  %v694_v24 = vld [vmem:[%s816_s3 + $0x20] sm:$0xff] }
   0x9   :  { %427 = vmatpush3.msra.mxu1 %v582_v8  ;;  %393 = vmatprep.subr.mxu0 %v492_v0  ;;  %v703_v25 = vld [vmem:[%s815_s2 + $0x18] sm:$0xff]  ;;  %v717_v27 = vld [vmem:[%s815_s2 + $0x10] sm:$0xff]  ;;  %v731_v29 = vld [vmem:[%s815_s2 + $0x8] sm:$0xff]  ;;  %v212_v44 = vadd.f32 %v666_v20, %v661_v19  ;;  %v211_v45 = vadd.f32 %v680_v22, %v675_v21  ;;  %v210_v46 = vadd.f32 %v694_v24, %v689_v23 }
   0xa   :  { %428 = vmatprep.subr.mxu1 %v492_v0  ;;  %394 = vmatpush3.msra.mxu0 %v591_v9  ;;  %v708_v26 = vld [vmem:[%s816_s3 + $0x18] sm:$0xff]  ;;  %v722_v28 = vld [vmem:[%s816_s3 + $0x10] sm:$0xff]  ;;  %v50_v30 = vld [vmem:[%s816_s3 + $0x8] sm:$0xff] }
   0xb   :  { %429 = vmatpush3.msra.mxu1 %v596_v10  ;;  %395 = vmatprep.subr.mxu0 %v492_v0  ;;  %v33_v31 = vld [vmem:[%s815_s2] sm:$0xff]  ;;  %v209_v47 = vadd.f32 %v708_v26, %v703_v25  ;;  %v208_v48 = vadd.f32 %v722_v28, %v717_v27  ;;  %v207_v49 = vadd.f32 %v50_v30, %v731_v29 }
   0xc   :  { %430 = vmatprep.subr.mxu1 %v492_v0  ;;  %396 = vmatpush3.msra.mxu0 %v605_v11  ;;  %v31_v32 = vld [vmem:[%s817_s0] sm:$0xff] }
   0xd   :  { %431 = vmatpush3.msra.mxu1 %v610_v12  ;;  %397 = vmatprep.subr.mxu0 %v492_v0  ;;  %v49_v33 = vld [vmem:[%s816_s3] sm:$0xff] }
   0xe   :  { %432 = vmatprep.subr.mxu1 %v492_v0  ;;  %398 = vmatpush3.msra.mxu0 %v619_v13  ;;  %v32_v35 = vld [vmem:[%s818_s1] sm:$0xff]  ;;  %v206_v50 = vadd.f32 %v49_v33, %v33_v31 }
   0xf   :  { %433 = vmatpush3.msra.mxu1 %v624_v14  ;;  %399 = vmatprep.subr.mxu0 %v492_v0  ;;  %v205_v51 = vadd.f32 %v32_v35, %v31_v32  ;;  %v332_v56 = vld [vmem:[%s819_s4] ss:$0 sm:$0xff] }
  0x10   :  { %434 = vmatprep.subr.mxu1 %v492_v0  ;;  %400 = vmatpush3.msra.mxu0 %v633_v15  ;;  %v333_v63 = vld [vmem:[%s821_s5] ss:$0 sm:$0xff] }
  0x11   :  { %435 = vmatpush3.msra.mxu1 %v638_v16  ;;  %401 = vmatprep.subr.mxu0 %v492_v0 }
  0x12   :  { %436 = vmatprep.subr.mxu1 %v492_v0  ;;  %402 = vmatpush3.msra.mxu0 %v647_v17 }
  0x13   :  { %437 = vmatpush3.msra.mxu1 %v652_v18  ;;  %403 = vmatprep.subr.mxu0 %v492_v0 }
  0x14   :  { %438 = vmatprep.subr.mxu1 %v492_v0  ;;  %404 = vmatpush3.msra.mxu0 %v661_v19 }
  0x15   :  { %439 = vmatpush3.msra.mxu1 %v666_v20  ;;  %405 = vmatprep.subr.mxu0 %v492_v0 }
  0x16   :  { %440 = vmatprep.subr.mxu1 %v492_v0  ;;  %406 = vmatpush3.msra.mxu0 %v675_v21 }
  0x17   :  { %441 = vmatpush3.msra.mxu1 %v680_v22  ;;  %407 = vmatprep.subr.mxu0 %v492_v0 }
  0x18   :  { %442 = vmatprep.subr.mxu1 %v492_v0  ;;  %408 = vmatpush3.msra.mxu0 %v689_v23 }
  0x19   :  { %443 = vmatpush3.msra.mxu1 %v694_v24  ;;  %409 = vmatprep.subr.mxu0 %v492_v0 }
  0x1a   :  { %444 = vmatprep.subr.mxu1 %v492_v0  ;;  %410 = vmatpush3.msra.mxu0 %v703_v25 }
  0x1b   :  { %445 = vmatpush3.msra.mxu1 %v708_v26  ;;  %411 = vmatprep.subr.mxu0 %v492_v0 }
  0x1c   :  { %446 = vmatprep.subr.mxu1 %v492_v0  ;;  %412 = vmatpush3.msra.mxu0 %v717_v27 }
  0x1d   :  { %447 = vmatpush3.msra.mxu1 %v722_v28  ;;  %413 = vmatprep.subr.mxu0 %v492_v0 }
  0x1e   :  { %448 = vmatprep.subr.mxu1 %v492_v0  ;;  %414 = vmatpush3.msra.mxu0 %v731_v29 }
  0x1f   :  { %449 = vmatpush3.msra.mxu1 %v50_v30  ;;  %415 = vmatprep.subr.mxu0 %v492_v0 }
  0x20   :  { %416 = vmatpush3.msra.mxu0 %v33_v31  ;;  %450 = vmatprep.subr.mxu1 %v492_v0 }
  0x21   :  { %418 = vmatmul.mubr.f32.vlgmr.msra.gmra.mxu0 %v31_v32  ;;  %451 = vmatpush3.msra.mxu1 %v49_v33 }
  0x22   :  { %452 = vmatprep.mubr.msk.f32.mxu1 %vm493_vm0, %v492_v0  ;;  %455 = vmatprep.subr.mxu0 %v492_v0 }
  0x23   :  { %453 = vmatmul.mubr.f32.vlgmr.msra.gmra.mxu1 %v32_v35  ;;  %456 = vmatpush3.msra.mxu0 %v221_v34 }
  0x24   :  { %457 = vmatprep.subr.mxu0 %v492_v0  ;;  %487 = vmatprep.mubr.msk.f32.mxu0 %vm493_vm0, %v492_v0 }
  0x25   :  { %458 = vmatpush3.msra.mxu0 %v220_v36 }
  0x26   :  { %459 = vmatprep.subr.mxu0 %v492_v0 }
  0x27   :  { %460 = vmatpush3.msra.mxu0 %v219_v37 }
  0x28   :  { %461 = vmatprep.subr.mxu0 %v492_v0 }
  0x29   :  { %462 = vmatpush3.msra.mxu0 %v218_v38 }
  0x2a   :  { %463 = vmatprep.subr.mxu0 %v492_v0 }
  0x2b   :  { %464 = vmatpush3.msra.mxu0 %v217_v39 }
  0x2c   :  { %465 = vmatprep.subr.mxu0 %v492_v0 }
  0x2d   :  { %466 = vmatpush3.msra.mxu0 %v216_v40 }
  0x2e   :  { %467 = vmatprep.subr.mxu0 %v492_v0 }
  0x2f   :  { %468 = vmatpush3.msra.mxu0 %v215_v41 }
  0x30   :  { %469 = vmatprep.subr.mxu0 %v492_v0 }
  0x31   :  { %470 = vmatpush3.msra.mxu0 %v214_v42 }
  0x32   :  { %471 = vmatprep.subr.mxu0 %v492_v0 }
  0x33   :  { %472 = vmatpush3.msra.mxu0 %v213_v43 }
  0x34   :  { %473 = vmatprep.subr.mxu0 %v492_v0 }
  0x35   :  { %474 = vmatpush3.msra.mxu0 %v212_v44 }
  0x36   :  { %475 = vmatprep.subr.mxu0 %v492_v0 }
  0x37   :  { %476 = vmatpush3.msra.mxu0 %v211_v45 }
  0x38   :  { %477 = vmatprep.subr.mxu0 %v492_v0 }
  0x39   :  { %478 = vmatpush3.msra.mxu0 %v210_v46 }
  0x3a   :  { %479 = vmatprep.subr.mxu0 %v492_v0 }
  0x3b   :  { %480 = vmatpush3.msra.mxu0 %v209_v47 }
  0x3c   :  { %481 = vmatprep.subr.mxu0 %v492_v0 }
  0x3d   :  { %482 = vmatpush3.msra.mxu0 %v208_v48 }
  0x3e   :  { %483 = vmatprep.subr.mxu0 %v492_v0 }
  0x3f   :  { %484 = vmatpush3.msra.mxu0 %v207_v49 }
  0x40   :  { %485 = vmatprep.subr.mxu0 %v492_v0 }
  0x41   :  { %486 = vmatpush3.msra.mxu0 %v206_v50 }
  0x42   :  { %488 = vmatmul.mubr.f32.vlgmr.msra.gmra.mxu0 %v205_v51 }
  0xe1   :  { %v131_v52 = vpop.f32.mrf.mxu0 }
  0xe3   :  { %v201_v53 = vpop.f32.mrf.mxu1  ;;  %v419_v54 = vpop.f32.mrf.mxu0 }
  0xe4   :  { %v293_v55 = vsub.f32 %v131_v52, %v201_v53 }
  0xe5   :  { %v454_v57 = vpop.f32.mrf.mxu1 }
  0xe6   :  { %v312_v58 = vadd.f32 %v332_v56, %v293_v55 }
  0xe8   :  { %313 = vst [vmem:[%s820_s6] sm:$0xff] %v312_v58 }
 0x102   :  { %v288_v59 = vpop.f32.mrf.mxu0 }
 0x103   :  { %v297_v60 = vsub.f32 %v288_v59, %v131_v52 }
 0x104   :  { %v489_v61 = vpop.f32.mrf.mxu0 }
 0x105   :  { %v298_v62 = vsub.f32 %v297_v60, %v201_v53 }
 0x107   :  { %v322_v0 = vadd.f32 %v333_v63, %v298_v62 }
 0x109   :  { %323 = vst [vmem:[%s822_s7] sm:$0xff] %v322_v0 }

// kernel: forward.2
= control target key start
LH: loop header
LB: loop body
LE: loop exit
PB: predicated region body
PF: predicated region fallthrough
CT: control target
= control target key end

     0   :  { %v326_v0 = vmov 0.0   ;;  %vm34_vm0 = vcmask 64512   ;;  %vm327_vm1 = vmmov 0   ;;  %v328_v8 = vmov 0   ;;  %s412_s0 = inlined_call_operand.vmem [shape: f32[8,128], index: 0, kind: input, shape index: {}]   ;;  %s413_s1 = inlined_call_operand.vmem [shape: f32[8,128], index: 1, kind: input, shape index: {}]   ;;  %s414_s2 = inlined_call_operand.vmem [shape: f32[8,8], index: 2, kind: input, shape index: {}, may-alias: {2,4}]   ;;  %s415_s3 = inlined_call_operand.vmem [shape: f32[8,8], index: 3, kind: input, shape index: {}]   ;;  %s416_s5 = inlined_call_operand.vmem [shape: f32[8,1], index: 5, kind: input, shape index: {}, may-alias: {5,6}]   ;;  %s417_s4 = inlined_call_operand.vmem [shape: f32[8,8], index: 4, kind: input, shape index: {}, may-alias: {2,4}]   ;;  %s418_s6 = inlined_call_operand.vmem [shape: f32[8,1], index: 6, kind: input, shape index: {}, may-alias: {5,6}]   ;;  %s419_s7 = inlined_call_operand.vmem [shape: f32[1,128], index: 7, kind: input, shape index: {}]   ;;  %s420_s8 = inlined_call_operand.vmem [shape: f32[8,128], index: 8, kind: output, shape index: {0}]   ;;  %s421_s9 = inlined_call_operand.vmem [shape: f32[8,128], index: 9, kind: output, shape index: {1}]  }
   0x1   :  { %307 = vmatprep.subr.mxu0 %v326_v0  ;;  %312 = vmatprep.subr.mxu1 %v326_v0  ;;  %v31_v1 = vld [vmem:[%s412_s0] sm:$0xff] }
   0x2   :  { %v32_v2 = vld [vmem:[%s413_s1] sm:$0xff]  ;;  %308 = vmatpush3.msra.mxu0 %v31_v1  ;;  %309 = vmatprep.mubr.msk.f32.mxu0 %vm327_vm1, %v326_v0 }
   0x3   :  { %v33_v3 = vld [vmem:[%s414_s2] sm:$0xff]  ;;  %v183_v4 = vadd.f32 %v32_v2, %v31_v1  ;;  %313 = vmatpush3.msra.mxu1 %v32_v2  ;;  %314 = vmatprep.mubr.msk.f32.mxu1 %vm327_vm1, %v326_v0 }
   0x4   :  { %v108_v5 = vld [vmem:[%s415_s3] sm:$0xff]  ;;  %310 = vmatmul.mubr.msk.f32.vlgmr.msra.gmra.mxu0 %vm34_vm0, %v33_v3  ;;  %317 = vmatprep.subr.mxu0 %v326_v0 }
   0x5   :  { %315 = vmatmul.mubr.msk.f32.vlgmr.msra.gmra.mxu1 %vm34_vm0, %v108_v5  ;;  %v258_v6 = vld [vmem:[%s416_s5] sm:$0xff]  ;;  %319 = vmatprep.mubr.msk.f32.mxu0 %vm327_vm1, %v326_v0 }
   0x6   :  { %v182_v7 = vld [vmem:[%s417_s4] sm:$0xff]  ;;  %318 = vmatpush3.msra.mxu0 %v183_v4  ;;  %325 = vset.pattern.permute.xlu0 %v328_v8 }
   0x7   :  { %261 = vperm.xlu0 %325, %v258_v6   ;;  %v267_v9 = vld [vmem:[%s418_s6] sm:$0xff] }
   0x8   :  { %320 = vmatmul.mubr.msk.f32.vlgmr.msra.gmra.mxu0 %vm34_vm0, %v182_v7  ;;  %v300_v17 = vld [vmem:[%s419_s7] ss:$0 sm:$0xff] }
   0xb   :  { %270 = vperm.xlu0 %325, %v267_v9  }
  0x82   :  { %v262_v13 = vpop.permute.xlu0 %261 }
  0x86   :  { %v271_v24 = vpop.permute.xlu0 %270 }
  0xc4   :  { %v104_v10 = vpop.f32.mrf.mxu0 }
  0xc5   :  { %v178_v11 = vpop.f32.mrf.mxu1 }
  0xc6   :  { %v257_v12 = vsub.f32 %v104_v10, %v178_v11  ;;  %v311_v14 = vpop.f32.mrf.mxu0 }
  0xc7   :  { %v316_v15 = vpop.f32.mrf.mxu1 }
  0xc8   :  { %v264_v16 = vadd.f32 %v262_v13, %v257_v12  ;;  %v253_v18 = vpop.f32.mrf.mxu0 }
  0xc9   :  { %v265_v20 = vsub.f32 %v253_v18, %v104_v10 }
  0xca   :  { %v275_v19 = vsub.f32 %v31_v1, %v264_v16  ;;  %v321_v21 = vpop.f32.mrf.mxu0 }
  0xcb   :  { %v266_v23 = vsub.f32 %v265_v20, %v178_v11 }
  0xcc   :  { %v282_v22 = vmul.f32 %v300_v17, %v275_v19 }
  0xcd   :  { %v273_v26 = vadd.f32 %v271_v24, %v266_v23 }
  0xce   :  { %v283_v25 = vadd.f32 %v282_v22, %v264_v16 }
  0xcf   :  { %v285_v27 = vsub.f32 %v32_v2, %v273_v26 }
  0xd0   :  { %284 = vst [vmem:[%s420_s8] sm:$0xff] %v283_v25 }
  0xd1   :  { %v286_v28 = vmul.f32 %v300_v17, %v285_v27 }
  0xd3   :  { %v287_v29 = vadd.f32 %v286_v28, %v273_v26 }
  0xd5   :  { %288 = vst [vmem:[%s421_s9] sm:$0xff] %v287_v29 }

</bundles_post_ra>
